<compile_context>
chip_gen: v5e
topology: v5e:2x2
jax: 0.10.0
libtpu: 0.0.40
codegen_flags: <defaults>
</compile_context>

<pallas_src>
import functools
import math

import jax
import jax.numpy as jnp
from jax.experimental import pallas as pl
from jax.experimental.pallas import tpu as pltpu


def _diff_mha_kernel(scal_ref,          # SMEM (1, 2) f32: [1-lambda_current, 1-lambda_init]
                     x_ref,             # (1, T, D) f32
                     wqkv_ref,          # (D, 4*H*di) bf16  [WQ1 heads | WK1 heads | WV heads]
                     bqkv_ref,          # (1, 4*H*di) f32
                     gam_ref, bet_ref,  # (1, 2*di) f32     shared LayerNorm affine
                     wo_ref,            # (2*H*di, dm) bf16
                     bo_ref,            # (1, dm) f32
                     out_ref,           # (1, tq, dm) f32
                     attn_ref,          # (1, H, tq, T) f32
                     q_s, k_s, v_s,     # VMEM bf16 scratch: (T,H*di),(T,H*di),(T,2*H*di)
                     *, num_heads, d_internal, tq):
    H, di = num_heads, d_internal
    Hdi = H * di
    D = x_ref.shape[2]
    qi = pl.program_id(1)

    one_minus_lam = scal_ref[0, 0]      # 1 - lambda_current
    head_scale = scal_ref[0, 1]         # 1 - lambda_init

    # Fused Q/K/V projection for the WHOLE sequence, computed once per batch
    # element (first query tile) and cached in bf16 VMEM scratch.
    @pl.when(qi == 0)
    def _():
        x_bf = x_ref[0].astype(jnp.bfloat16)                               # (T, D)
        qkv = jnp.dot(x_bf, wqkv_ref[...],
                      preferred_element_type=jnp.float32) + bqkv_ref[...]  # (T, 4Hdi)
        inv_sqrt_d = 1.0 / math.sqrt(D)
        q_s[...] = (qkv[:, :Hdi] * inv_sqrt_d).astype(jnp.bfloat16)        # scale folded into Q
        k_s[...] = qkv[:, Hdi:2 * Hdi].astype(jnp.bfloat16)
        v_s[...] = qkv[:, 2 * Hdi:].astype(jnp.bfloat16)

    # Fold the (1 - lambda_init) head scale into the shared LayerNorm affine.
    g = gam_ref[...] * head_scale                                          # (1, 2di)
    b = bet_ref[...] * head_scale

    row0 = pl.multiple_of(qi * tq, tq)

    ln_parts = []
    for h in range(H):                                                     # static unroll
        q_h = q_s[pl.ds(row0, tq), h * di:(h + 1) * di]                    # (tq, di) bf16
        k_h = k_s[:, h * di:(h + 1) * di]                                  # (T,  di) bf16
        v_h = v_s[:, 2 * h * di:2 * (h + 1) * di]                          # (T, 2di) bf16

        s = jnp.dot(q_h, k_h.T, preferred_element_type=jnp.float32)        # (tq, T) f32
        m = jnp.max(s, axis=-1, keepdims=True)
        e = jnp.exp(s - m)
        denom = jnp.sum(e, axis=-1, keepdims=True)
        # A = A1 - lambda*A2 == (1 - lambda) * A1 because the reference
        # forward (buggily) reuses WQ1/WK1 for Q2/K2.
        a = e * (pl.reciprocal(denom, approx=True) * one_minus_lam)        # (tq, T)

        attn_ref[0, h] = a

        af = jnp.dot(a.astype(jnp.bfloat16), v_h,
                     preferred_element_type=jnp.float32)                   # (tq, 2di) f32

        mu = jnp.mean(af, axis=-1, keepdims=True)
        c = af - mu
        var = jnp.mean(c * c, axis=-1, keepdims=True)
        ln_parts.append(c * jax.lax.rsqrt(var + 1e-5) * g + b)             # (tq, 2di) f32

    # torch.cat(results, dim=2) followed by WO, as ONE wide MXU matmul.
    cat = jnp.concatenate(ln_parts, axis=-1).astype(jnp.bfloat16)          # (tq, 2Hdi)
    out_ref[0] = (jnp.dot(cat, wo_ref[...], preferred_element_type=jnp.float32)
                  + bo_ref[...]).astype(out_ref.dtype)


def diff_multi_head_attention(x, params, lambda_current, lambda_init, *, tq=None):
    """x: (B, T, d_model) f32. Returns (results (B,T,d_model), attn (B,H,T,T))."""
    B, T, D = x.shape
    H, _, di = params["wq1"].shape
    dm = params["wo"].shape[-1]
    Hdi = H * di
    tdi = 2 * di

    if tq is None:
        tq = T if T <= 256 else 256     # keep query tiles v7x-friendly
    assert T % tq == 0, "sequence length must be divisible by the query tile"
    nq = T // tq

    # --- pack / fuse the parameters (layout plumbing, done once per call) ---
    wq = jnp.transpose(params["wq1"], (1, 0, 2)).reshape(D, Hdi)
    wk = jnp.transpose(params["wk1"], (1, 0, 2)).reshape(D, Hdi)
    wv = jnp.transpose(params["wv"], (1, 0, 2)).reshape(D, 2 * Hdi)
    wqkv = jnp.concatenate([wq, wk, wv], axis=1).astype(jnp.bfloat16)      # (D, 4Hdi)
    bqkv = jnp.concatenate([params["bq1"].reshape(1, Hdi),
                            params["bk1"].reshape(1, Hdi),
                            params["bv"].reshape(1, 2 * Hdi)], axis=1)     # (1, 4Hdi) f32
    wo2d = params["wo"].reshape(2 * Hdi, dm).astype(jnp.bfloat16)          # (2Hdi, dm)
    bo = params["bo"].reshape(1, dm)
    gamma = params["ln_gamma"].reshape(1, tdi)
    beta = params["ln_beta"].reshape(1, tdi)

    scal = jnp.array([[1.0 - lambda_current, 1.0 - lambda_init]], jnp.float32)

    # --- VMEM budget from the chosen tiles (double-buffered IO + scratch) ---
    io_bytes = (T * D * 4                                   # x slab
                + D * 4 * Hdi * 2 + 4 * Hdi * 4             # wqkv (bf16) + bqkv
                + 2 * tdi * 4                               # LN gamma/beta
                + 2 * Hdi * dm * 2 + dm * 4                 # wo (bf16) + bo
                + tq * dm * 4 + H * tq * T * 4)             # out + attn blocks
    scratch_bytes = 4 * T * Hdi * 2                         # bf16 Q/K/V scratch
    tmp_bytes = T * 4 * Hdi * 4 + 4 * tq * T * 4            # f32 qkv temp + score temps
    need = 2 * io_bytes + scratch_bytes + tmp_bytes
    try:
        vmem_cap = int(pltpu.get_tpu_info().vmem_capacity_bytes)
    except Exception:
        vmem_cap = 64 << 20                                 # conservative (v7x) fallback
    vmem_limit = int(min(max(need, 16 << 20), (vmem_cap * 3) // 4))

    kernel = functools.partial(_diff_mha_kernel,
                               num_heads=H, d_internal=di, tq=tq)

    shared = lambda shape: pl.BlockSpec(shape, lambda b, i: (0, 0))

    out, attn = pl.pallas_call(
        kernel,
        out_shape=(
            jax.ShapeDtypeStruct((B, T, dm), jnp.float32),
            jax.ShapeDtypeStruct((B, H, T, T), jnp.float32),
        ),
        grid=(B, nq),
        in_specs=[
            pl.BlockSpec(memory_space=pltpu.SMEM),                     # [1-lam, 1-lam_init]
            pl.BlockSpec((1, T, D), lambda b, i: (b, 0, 0)),           # x (full sequence)
            shared((D, 4 * Hdi)),                                      # fused WQ1|WK1|WV
            shared((1, 4 * Hdi)),                                      # fused biases
            shared((1, tdi)), shared((1, tdi)),                        # LN gamma, beta
            shared((2 * Hdi, dm)),                                     # WO
            shared((1, dm)),                                           # bO
        ],
        out_specs=(
            pl.BlockSpec((1, tq, dm), lambda b, i: (b, i, 0)),         # fused output
            pl.BlockSpec((1, H, tq, T), lambda b, i: (b, 0, i, 0)),    # attention maps
        ),
        scratch_shapes=[
            pltpu.VMEM((T, Hdi), jnp.bfloat16),                        # Q (scaled)
            pltpu.VMEM((T, Hdi), jnp.bfloat16),                        # K
            pltpu.VMEM((T, 2 * Hdi), jnp.bfloat16),                    # V
        ],
        compiler_params=pltpu.CompilerParams(
            dimension_semantics=("parallel", "arbitrary"),
            vmem_limit_bytes=vmem_limit),
    )(scal, x, wqkv, bqkv, gamma, beta, wo2d, bo)
    return out, attn


def init_params(key, d_model, d_internal, num_heads):
    """Deterministic synthetic parameters. Per-head weights stacked on axis 0,
    stored pre-transposed as (in_features, out_features)."""
    H, D, di = num_heads, d_model, d_internal
    ks = jax.random.split(key, 12)
    s = 0.05
    return {
        "wq1": s * jax.random.normal(ks[0], (H, D, di), jnp.float32),
        "bq1": s * jax.random.normal(ks[1], (H, 1, di), jnp.float32),
        "wk1": s * jax.random.normal(ks[2], (H, D, di), jnp.float32),
        "bk1": s * jax.random.normal(ks[3], (H, 1, di), jnp.float32),
        # WQ2 / WK2 exist in __init__ but are unused by the reference forward.
        "wq2": s * jax.random.normal(ks[4], (H, D, di), jnp.float32),
        "bq2": s * jax.random.normal(ks[5], (H, 1, di), jnp.float32),
        "wk2": s * jax.random.normal(ks[6], (H, D, di), jnp.float32),
        "bk2": s * jax.random.normal(ks[7], (H, 1, di), jnp.float32),
        "wv":  s * jax.random.normal(ks[8], (H, D, 2 * di), jnp.float32),
        "bv":  s * jax.random.normal(ks[9], (H, 1, 2 * di), jnp.float32),
        # Shared LayerNorm(2*d_internal): PyTorch default init gamma=1, beta=0.
        "ln_gamma": jnp.ones((1, 2 * di), jnp.float32),
        "ln_beta":  jnp.zeros((1, 2 * di), jnp.float32),
        # WO: Linear(2*H*di, d_model), stored per head as (H, 2di, d_model)
        # so that concatenation order matches torch.cat(results, dim=2).
        "wo": s * jax.random.normal(ks[10], (H, 2 * di, d_model), jnp.float32),
        "bo": s * jax.random.normal(ks[11], (1, d_model), jnp.float32),
    }


def reference_forward(x, params, lambda_current, lambda_init):
    """Pure-JAX f32 reference replicating the PyTorch module forward exactly."""
    D = x.shape[-1]
    H, _, di = params["wq1"].shape
    dm = params["wo"].shape[-1]
    scale = D ** 0.5
    outs, attns = [], []
    for h in range(H):
        q1 = x @ params["wq1"][h] + params["bq1"][h]
        k1 = x @ params["wk1"][h] + params["bk1"][h]
        q2 = x @ params["wq1"][h] + params["bq1"][h]   # reference reuses WQ1
        k2 = x @ params["wk1"][h] + params["bk1"][h]   # reference reuses WK1
        v = x @ params["wv"][h] + params["bv"][h]
        qk1 = jnp.einsum("btd,bsd->bts", q1, k1) / scale
        qk2 = jnp.einsum("btd,bsd->bts", q2, k2) / scale
        a1 = jax.nn.softmax(qk1, axis=-1)
        a2 = jax.nn.softmax(qk2, axis=-1)
        a = a1 - lambda_current * a2
        af = jnp.einsum("bts,bsd->btd", a, v)
        mu = jnp.mean(af, axis=-1, keepdims=True)
        c = af - mu
        var = jnp.mean(c * c, axis=-1, keepdims=True)
        ln = c / jnp.sqrt(var + 1e-5) * params["ln_gamma"] + params["ln_beta"]
        outs.append(ln * (1.0 - lambda_init))
        attns.append(a)
    res = jnp.concatenate(outs, axis=-1)
    wo_cat = params["wo"].reshape(H * 2 * di, dm)
    res = jnp.einsum("bti,io->bto", res, wo_cat) + params["bo"]
    return res, jnp.stack(attns, axis=1)


if __name__ == "__main__":
    B, T, d_model, d_internal, num_heads = 2, 8, 32, 16, 4
    lambda_init = 0.8
    lambda_current = 0.3

    key = jax.random.PRNGKey(0)
    kx, kp = jax.random.split(key)
    x = jax.random.normal(kx, (B, T, d_model), jnp.float32)
    params = init_params(kp, d_model, d_internal, num_heads)

    out, attn = diff_multi_head_attention(x, params, lambda_current, lambda_init)
    jax.block_until_ready((out, attn))

    ref_out, ref_attn = reference_forward(x, params, lambda_current, lambda_init)
    assert out.shape == (B, T, d_model)
    assert attn.shape == (B, num_heads, T, T)
    # bf16 matmul operands + approximate softmax reciprocal -> ~1e-3 agreement
    # with the f32 reference (structure-level check, not bitwise).
    assert jnp.allclose(attn, ref_attn, atol=1e-2, rtol=1e-2)
    assert jnp.allclose(out, ref_out, atol=1e-2, rtol=1e-2)

    print("KERNEL_OK")
</pallas_src>

<mosaic_0001>
module attributes {stable_mosaic.version = 11 : i64} {
  func.func @_diff_mha_kernel(%arg0: i32, %arg1: i32, %arg2: memref<1x2xf32, #tpu.memory_space<smem>>, %arg3: memref<1x8x32xf32, #tpu.memory_space<vmem>>, %arg4: memref<32x256xbf16, #tpu.memory_space<vmem>>, %arg5: memref<1x256xf32, #tpu.memory_space<vmem>>, %arg6: memref<1x32xf32, #tpu.memory_space<vmem>>, %arg7: memref<1x32xf32, #tpu.memory_space<vmem>>, %arg8: memref<128x32xbf16, #tpu.memory_space<vmem>>, %arg9: memref<1x32xf32, #tpu.memory_space<vmem>>, %arg10: memref<1x8x32xf32, #tpu.memory_space<vmem>>, %arg11: memref<1x4x8x8xf32, #tpu.memory_space<vmem>>, %arg12: memref<8x64xbf16, #tpu.memory_space<vmem>>, %arg13: memref<8x64xbf16, #tpu.memory_space<vmem>>, %arg14: memref<8x128xbf16, #tpu.memory_space<vmem>>) attributes {dimension_semantics = [#tpu.dimension_semantics<parallel>, #tpu.dimension_semantics<arbitrary>], iteration_bounds = array<i64: 2, 1>, scalar_prefetch = 0 : i64, scratch_operands = 3 : i64, tpu.core_type = #tpu.core_type<tc>, window_params = [{transform_indices = @transform_0, window_bounds = array<i64: 1, 2>}, {transform_indices = @transform_1, window_bounds = array<i64: 1, 8, 32>}, {pipeline_mode = #tpu.pipeline_mode<synchronous>, transform_indices = @transform_2, window_bounds = array<i64: 32, 256>}, {pipeline_mode = #tpu.pipeline_mode<synchronous>, transform_indices = @transform_3, window_bounds = array<i64: 1, 256>}, {pipeline_mode = #tpu.pipeline_mode<synchronous>, transform_indices = @transform_4, window_bounds = array<i64: 1, 32>}, {pipeline_mode = #tpu.pipeline_mode<synchronous>, transform_indices = @transform_5, window_bounds = array<i64: 1, 32>}, {pipeline_mode = #tpu.pipeline_mode<synchronous>, transform_indices = @transform_6, window_bounds = array<i64: 128, 32>}, {pipeline_mode = #tpu.pipeline_mode<synchronous>, transform_indices = @transform_7, window_bounds = array<i64: 1, 32>}, {transform_indices = @transform_8, window_bounds = array<i64: 1, 8, 32>}, {transform_indices = @transform_9, window_bounds = array<i64: 1, 4, 8, 8>}]} {
    %c0 = arith.constant 0 : index
    %c0_0 = arith.constant 0 : index
    %0 = memref.load %arg2[%c0, %c0_0] : memref<1x2xf32, #tpu.memory_space<smem>>
    %c0_1 = arith.constant 0 : index
    %c1 = arith.constant 1 : index
    %1 = memref.load %arg2[%c0_1, %c1] : memref<1x2xf32, #tpu.memory_space<smem>>
    %c0_i32 = arith.constant 0 : i32
    %2 = arith.cmpi eq, %arg1, %c0_i32 : i32
    %3 = arith.extui %2 : i1 to i32
    %c0_i32_2 = arith.constant 0 : i32
    %4 = arith.cmpi ne, %3, %c0_i32_2 : i32
    scf.if %4 {
      %c0_79 = arith.constant 0 : index
      %c0_80 = arith.constant 0 : index
      %c0_81 = arith.constant 0 : index
      %195 = vector.load %arg3[%c0_79, %c0_80, %c0_81] : memref<1x8x32xf32, #tpu.memory_space<vmem>>, vector<1x8x32xf32>
      %196 = vector.shape_cast %195 : vector<1x8x32xf32> to vector<8x32xf32>
      %197 = arith.truncf %196 : vector<8x32xf32> to vector<8x32xbf16>
      %c0_82 = arith.constant 0 : index
      %c0_83 = arith.constant 0 : index
      %198 = vector.load %arg4[%c0_82, %c0_83] : memref<32x256xbf16, #tpu.memory_space<vmem>>, vector<32x256xbf16>
      %cst_84 = arith.constant dense<0.000000e+00> : vector<8x256xf32>
      %199 = tpu.matmul %197, %198, %cst_84 {dimension_numbers = #tpu.dot_dimension_numbers<[1], [0], [0], [1], [0, 0, 1, 1], [], []>} : vector<8x32xbf16>, vector<32x256xbf16>, vector<8x256xf32> -> vector<8x256xf32>
      %c0_85 = arith.constant 0 : index
      %c0_86 = arith.constant 0 : index
      %200 = vector.load %arg5[%c0_85, %c0_86] : memref<1x256xf32, #tpu.memory_space<vmem>>, vector<1x256xf32>
      %201 = vector.broadcast %200 : vector<1x256xf32> to vector<8x256xf32>
      %202 = arith.addf %199, %201 : vector<8x256xf32>
      %203 = vector.extract_strided_slice %202 {offsets = [0, 0], sizes = [8, 64], strides = [1, 1]} : vector<8x256xf32> to vector<8x64xf32>
      %cst_87 = arith.constant 0.176776692 : f32
      %204 = vector.broadcast %cst_87 : f32 to vector<8x64xf32>
      %205 = arith.mulf %203, %204 : vector<8x64xf32>
      %206 = arith.truncf %205 : vector<8x64xf32> to vector<8x64xbf16>
      %c0_88 = arith.constant 0 : index
      %c0_89 = arith.constant 0 : index
      %207 = vector.load %arg12[%c0_88, %c0_89] : memref<8x64xbf16, #tpu.memory_space<vmem>>, vector<8x64xbf16>
      tpu.vector_store %arg12[%c0_88, %c0_89], %206 {strides = array<i32>} : memref<8x64xbf16, #tpu.memory_space<vmem>>, vector<8x64xbf16>,
      %208 = vector.extract_strided_slice %202 {offsets = [0, 64], sizes = [8, 64], strides = [1, 1]} : vector<8x256xf32> to vector<8x64xf32>
      %209 = arith.truncf %208 : vector<8x64xf32> to vector<8x64xbf16>
      %c0_90 = arith.constant 0 : index
      %c0_91 = arith.constant 0 : index
      %210 = vector.load %arg13[%c0_90, %c0_91] : memref<8x64xbf16, #tpu.memory_space<vmem>>, vector<8x64xbf16>
      tpu.vector_store %arg13[%c0_90, %c0_91], %209 {strides = array<i32>} : memref<8x64xbf16, #tpu.memory_space<vmem>>, vector<8x64xbf16>,
      %211 = vector.extract_strided_slice %202 {offsets = [0, 128], sizes = [8, 128], strides = [1, 1]} : vector<8x256xf32> to vector<8x128xf32>
      %212 = arith.truncf %211 : vector<8x128xf32> to vector<8x128xbf16>
      %c0_92 = arith.constant 0 : index
      %c0_93 = arith.constant 0 : index
      %213 = vector.load %arg14[%c0_92, %c0_93] : memref<8x128xbf16, #tpu.memory_space<vmem>>, vector<8x128xbf16>
      tpu.vector_store %arg14[%c0_92, %c0_93], %212 {strides = array<i32>} : memref<8x128xbf16, #tpu.memory_space<vmem>>, vector<8x128xbf16>,
    } else {
    }
    %c0_3 = arith.constant 0 : index
    %c0_4 = arith.constant 0 : index
    %5 = vector.load %arg6[%c0_3, %c0_4] : memref<1x32xf32, #tpu.memory_space<vmem>>, vector<1x32xf32>
    %6 = vector.broadcast %1 : f32 to vector<1x32xf32>
    %7 = arith.mulf %5, %6 : vector<1x32xf32>
    %c0_5 = arith.constant 0 : index
    %c0_6 = arith.constant 0 : index
    %8 = vector.load %arg7[%c0_5, %c0_6] : memref<1x32xf32, #tpu.memory_space<vmem>>, vector<1x32xf32>
    %9 = vector.broadcast %1 : f32 to vector<1x32xf32>
    %10 = arith.mulf %8, %9 : vector<1x32xf32>
    %c8_i32 = arith.constant 8 : i32
    %11 = arith.muli %arg1, %c8_i32 : i32
    %12 = tpu.assume_multiple %11, 8 : i32
    %13 = arith.index_cast %12 : i32 to index
    %c0_7 = arith.constant 0 : index
    %14 = vector.load %arg12[%13, %c0_7] : memref<8x64xbf16, #tpu.memory_space<vmem>>, vector<8x16xbf16>
    %c0_8 = arith.constant 0 : index
    %c0_9 = arith.constant 0 : index
    %15 = vector.load %arg13[%c0_8, %c0_9] : memref<8x64xbf16, #tpu.memory_space<vmem>>, vector<8x16xbf16>
    %c0_10 = arith.constant 0 : index
    %c0_11 = arith.constant 0 : index
    %16 = vector.load %arg14[%c0_10, %c0_11] : memref<8x128xbf16, #tpu.memory_space<vmem>>, vector<8x32xbf16>
    %17 = tpu.transpose %15, [1, 0] : vector<8x16xbf16> -> vector<16x8xbf16>
    %cst = arith.constant dense<0.000000e+00> : vector<8x8xf32>
    %18 = tpu.matmul %14, %17, %cst {dimension_numbers = #tpu.dot_dimension_numbers<[1], [0], [0], [1], [0, 0, 1, 1], [], []>} : vector<8x16xbf16>, vector<16x8xbf16>, vector<8x8xf32> -> vector<8x8xf32>
    %cst_12 = arith.constant dense<0xFF800000> : vector<8xf32>
    %19 = vector.multi_reduction <maximumf>, %18, %cst_12 [1] : vector<8x8xf32> to vector<8xf32>
    %20 = vector.shape_cast %19 : vector<8xf32> to vector<8x1xf32>
    %21 = vector.broadcast %20 : vector<8x1xf32> to vector<8x8xf32>
    %22 = arith.subf %18, %21 : vector<8x8xf32>
    %23 = math.exp %22 : vector<8x8xf32>
    %cst_13 = arith.constant dense<0.000000e+00> : vector<8xf32>
    %24 = vector.multi_reduction <add>, %23, %cst_13 [1] : vector<8x8xf32> to vector<8xf32>
    %25 = vector.shape_cast %24 : vector<8xf32> to vector<8x1xf32>
    %26 = tpu.reciprocal %25 {approx = true} : vector<8x1xf32> -> vector<8x1xf32>
    %27 = vector.broadcast %0 : f32 to vector<8x1xf32>
    %28 = arith.mulf %26, %27 : vector<8x1xf32>
    %29 = vector.broadcast %28 : vector<8x1xf32> to vector<8x8xf32>
    %30 = arith.mulf %23, %29 : vector<8x8xf32>
    %c0_14 = arith.constant 0 : index
    %c0_15 = arith.constant 0 : index
    %c0_16 = arith.constant 0 : index
    %c0_17 = arith.constant 0 : index
    %31 = vector.load %arg11[%c0_14, %c0_15, %c0_16, %c0_17] : memref<1x4x8x8xf32, #tpu.memory_space<vmem>>, vector<1x1x8x8xf32>
    %32 = vector.shape_cast %31 : vector<1x1x8x8xf32> to vector<8x8xf32>
    %33 = vector.shape_cast %30 : vector<8x8xf32> to vector<1x1x8x8xf32>
    tpu.vector_store %arg11[%c0_14, %c0_15, %c0_16, %c0_17], %33 {strides = array<i32>} : memref<1x4x8x8xf32, #tpu.memory_space<vmem>>, vector<1x1x8x8xf32>,
    %34 = arith.truncf %30 : vector<8x8xf32> to vector<8x8xbf16>
    %cst_18 = arith.constant dense<0.000000e+00> : vector<8x32xf32>
    %35 = tpu.matmul %34, %16, %cst_18 {dimension_numbers = #tpu.dot_dimension_numbers<[1], [0], [0], [1], [0, 0, 1, 1], [], []>} : vector<8x8xbf16>, vector<8x32xbf16>, vector<8x32xf32> -> vector<8x32xf32>
    %cst_19 = arith.constant dense<0.000000e+00> : vector<8xf32>
    %36 = vector.multi_reduction <add>, %35, %cst_19 [1] : vector<8x32xf32> to vector<8xf32>
    %37 = vector.shape_cast %36 : vector<8xf32> to vector<8x1xf32>
    %cst_20 = arith.constant 3.200000e+01 : f32
    %38 = vector.broadcast %cst_20 : f32 to vector<8x1xf32>
    %39 = arith.divf %37, %38 : vector<8x1xf32>
    %40 = vector.broadcast %39 : vector<8x1xf32> to vector<8x32xf32>
    %41 = arith.subf %35, %40 : vector<8x32xf32>
    %42 = arith.mulf %41, %41 : vector<8x32xf32>
    %cst_21 = arith.constant dense<0.000000e+00> : vector<8xf32>
    %43 = vector.multi_reduction <add>, %42, %cst_21 [1] : vector<8x32xf32> to vector<8xf32>
    %44 = vector.shape_cast %43 : vector<8xf32> to vector<8x1xf32>
    %cst_22 = arith.constant 3.200000e+01 : f32
    %45 = vector.broadcast %cst_22 : f32 to vector<8x1xf32>
    %46 = arith.divf %44, %45 : vector<8x1xf32>
    %cst_23 = arith.constant 9.99999974E-6 : f32
    %47 = vector.broadcast %cst_23 : f32 to vector<8x1xf32>
    %48 = arith.addf %46, %47 : vector<8x1xf32>
    %49 = math.rsqrt %48 : vector<8x1xf32>
    %50 = vector.broadcast %49 : vector<8x1xf32> to vector<8x32xf32>
    %51 = arith.mulf %41, %50 : vector<8x32xf32>
    %52 = vector.broadcast %7 : vector<1x32xf32> to vector<8x32xf32>
    %53 = arith.mulf %51, %52 : vector<8x32xf32>
    %54 = vector.broadcast %10 : vector<1x32xf32> to vector<8x32xf32>
    %55 = arith.addf %53, %54 : vector<8x32xf32>
    %56 = arith.index_cast %12 : i32 to index
    %c16 = arith.constant 16 : index
    %57 = vector.load %arg12[%56, %c16] : memref<8x64xbf16, #tpu.memory_space<vmem>>, vector<8x16xbf16>
    %c0_24 = arith.constant 0 : index
    %c16_25 = arith.constant 16 : index
    %58 = vector.load %arg13[%c0_24, %c16_25] : memref<8x64xbf16, #tpu.memory_space<vmem>>, vector<8x16xbf16>
    %c0_26 = arith.constant 0 : index
    %c32 = arith.constant 32 : index
    %59 = vector.load %arg14[%c0_26, %c32] : memref<8x128xbf16, #tpu.memory_space<vmem>>, vector<8x32xbf16>
    %60 = tpu.transpose %58, [1, 0] : vector<8x16xbf16> -> vector<16x8xbf16>
    %cst_27 = arith.constant dense<0.000000e+00> : vector<8x8xf32>
    %61 = tpu.matmul %57, %60, %cst_27 {dimension_numbers = #tpu.dot_dimension_numbers<[1], [0], [0], [1], [0, 0, 1, 1], [], []>} : vector<8x16xbf16>, vector<16x8xbf16>, vector<8x8xf32> -> vector<8x8xf32>
    %cst_28 = arith.constant dense<0xFF800000> : vector<8xf32>
    %62 = vector.multi_reduction <maximumf>, %61, %cst_28 [1] : vector<8x8xf32> to vector<8xf32>
    %63 = vector.shape_cast %62 : vector<8xf32> to vector<8x1xf32>
    %64 = vector.broadcast %63 : vector<8x1xf32> to vector<8x8xf32>
    %65 = arith.subf %61, %64 : vector<8x8xf32>
    %66 = math.exp %65 : vector<8x8xf32>
    %cst_29 = arith.constant dense<0.000000e+00> : vector<8xf32>
    %67 = vector.multi_reduction <add>, %66, %cst_29 [1] : vector<8x8xf32> to vector<8xf32>
    %68 = vector.shape_cast %67 : vector<8xf32> to vector<8x1xf32>
    %69 = tpu.reciprocal %68 {approx = true} : vector<8x1xf32> -> vector<8x1xf32>
    %70 = vector.broadcast %0 : f32 to vector<8x1xf32>
    %71 = arith.mulf %69, %70 : vector<8x1xf32>
    %72 = vector.broadcast %71 : vector<8x1xf32> to vector<8x8xf32>
    %73 = arith.mulf %66, %72 : vector<8x8xf32>
    %c0_30 = arith.constant 0 : index
    %c1_31 = arith.constant 1 : index
    %c0_32 = arith.constant 0 : index
    %c0_33 = arith.constant 0 : index
    %74 = vector.load %arg11[%c0_30, %c1_31, %c0_32, %c0_33] : memref<1x4x8x8xf32, #tpu.memory_space<vmem>>, vector<1x1x8x8xf32>
    %75 = vector.shape_cast %74 : vector<1x1x8x8xf32> to vector<8x8xf32>
    %76 = vector.shape_cast %73 : vector<8x8xf32> to vector<1x1x8x8xf32>
    tpu.vector_store %arg11[%c0_30, %c1_31, %c0_32, %c0_33], %76 {strides = array<i32>} : memref<1x4x8x8xf32, #tpu.memory_space<vmem>>, vector<1x1x8x8xf32>,
    %77 = arith.truncf %73 : vector<8x8xf32> to vector<8x8xbf16>
    %cst_34 = arith.constant dense<0.000000e+00> : vector<8x32xf32>
    %78 = tpu.matmul %77, %59, %cst_34 {dimension_numbers = #tpu.dot_dimension_numbers<[1], [0], [0], [1], [0, 0, 1, 1], [], []>} : vector<8x8xbf16>, vector<8x32xbf16>, vector<8x32xf32> -> vector<8x32xf32>
    %cst_35 = arith.constant dense<0.000000e+00> : vector<8xf32>
    %79 = vector.multi_reduction <add>, %78, %cst_35 [1] : vector<8x32xf32> to vector<8xf32>
    %80 = vector.shape_cast %79 : vector<8xf32> to vector<8x1xf32>
    %cst_36 = arith.constant 3.200000e+01 : f32
    %81 = vector.broadcast %cst_36 : f32 to vector<8x1xf32>
    %82 = arith.divf %80, %81 : vector<8x1xf32>
    %83 = vector.broadcast %82 : vector<8x1xf32> to vector<8x32xf32>
    %84 = arith.subf %78, %83 : vector<8x32xf32>
    %85 = arith.mulf %84, %84 : vector<8x32xf32>
    %cst_37 = arith.constant dense<0.000000e+00> : vector<8xf32>
    %86 = vector.multi_reduction <add>, %85, %cst_37 [1] : vector<8x32xf32> to vector<8xf32>
    %87 = vector.shape_cast %86 : vector<8xf32> to vector<8x1xf32>
    %cst_38 = arith.constant 3.200000e+01 : f32
    %88 = vector.broadcast %cst_38 : f32 to vector<8x1xf32>
    %89 = arith.divf %87, %88 : vector<8x1xf32>
    %cst_39 = arith.constant 9.99999974E-6 : f32
    %90 = vector.broadcast %cst_39 : f32 to vector<8x1xf32>
    %91 = arith.addf %89, %90 : vector<8x1xf32>
    %92 = math.rsqrt %91 : vector<8x1xf32>
    %93 = vector.broadcast %92 : vector<8x1xf32> to vector<8x32xf32>
    %94 = arith.mulf %84, %93 : vector<8x32xf32>
    %95 = vector.broadcast %7 : vector<1x32xf32> to vector<8x32xf32>
    %96 = arith.mulf %94, %95 : vector<8x32xf32>
    %97 = vector.broadcast %10 : vector<1x32xf32> to vector<8x32xf32>
    %98 = arith.addf %96, %97 : vector<8x32xf32>
    %99 = arith.index_cast %12 : i32 to index
    %c32_40 = arith.constant 32 : index
    %100 = vector.load %arg12[%99, %c32_40] : memref<8x64xbf16, #tpu.memory_space<vmem>>, vector<8x16xbf16>
    %c0_41 = arith.constant 0 : index
    %c32_42 = arith.constant 32 : index
    %101 = vector.load %arg13[%c0_41, %c32_42] : memref<8x64xbf16, #tpu.memory_space<vmem>>, vector<8x16xbf16>
    %c0_43 = arith.constant 0 : index
    %c64 = arith.constant 64 : index
    %102 = vector.load %arg14[%c0_43, %c64] : memref<8x128xbf16, #tpu.memory_space<vmem>>, vector<8x32xbf16>
    %103 = tpu.transpose %101, [1, 0] : vector<8x16xbf16> -> vector<16x8xbf16>
    %cst_44 = arith.constant dense<0.000000e+00> : vector<8x8xf32>
    %104 = tpu.matmul %100, %103, %cst_44 {dimension_numbers = #tpu.dot_dimension_numbers<[1], [0], [0], [1], [0, 0, 1, 1], [], []>} : vector<8x16xbf16>, vector<16x8xbf16>, vector<8x8xf32> -> vector<8x8xf32>
    %cst_45 = arith.constant dense<0xFF800000> : vector<8xf32>
    %105 = vector.multi_reduction <maximumf>, %104, %cst_45 [1] : vector<8x8xf32> to vector<8xf32>
    %106 = vector.shape_cast %105 : vector<8xf32> to vector<8x1xf32>
    %107 = vector.broadcast %106 : vector<8x1xf32> to vector<8x8xf32>
    %108 = arith.subf %104, %107 : vector<8x8xf32>
    %109 = math.exp %108 : vector<8x8xf32>
    %cst_46 = arith.constant dense<0.000000e+00> : vector<8xf32>
    %110 = vector.multi_reduction <add>, %109, %cst_46 [1] : vector<8x8xf32> to vector<8xf32>
    %111 = vector.shape_cast %110 : vector<8xf32> to vector<8x1xf32>
    %112 = tpu.reciprocal %111 {approx = true} : vector<8x1xf32> -> vector<8x1xf32>
    %113 = vector.broadcast %0 : f32 to vector<8x1xf32>
    %114 = arith.mulf %112, %113 : vector<8x1xf32>
    %115 = vector.broadcast %114 : vector<8x1xf32> to vector<8x8xf32>
    %116 = arith.mulf %109, %115 : vector<8x8xf32>
    %c0_47 = arith.constant 0 : index
    %c2 = arith.constant 2 : index
    %c0_48 = arith.constant 0 : index
    %c0_49 = arith.constant 0 : index
    %117 = vector.load %arg11[%c0_47, %c2, %c0_48, %c0_49] : memref<1x4x8x8xf32, #tpu.memory_space<vmem>>, vector<1x1x8x8xf32>
    %118 = vector.shape_cast %117 : vector<1x1x8x8xf32> to vector<8x8xf32>
    %119 = vector.shape_cast %116 : vector<8x8xf32> to vector<1x1x8x8xf32>
    tpu.vector_store %arg11[%c0_47, %c2, %c0_48, %c0_49], %119 {strides = array<i32>} : memref<1x4x8x8xf32, #tpu.memory_space<vmem>>, vector<1x1x8x8xf32>,
    %120 = arith.truncf %116 : vector<8x8xf32> to vector<8x8xbf16>
    %cst_50 = arith.constant dense<0.000000e+00> : vector<8x32xf32>
    %121 = tpu.matmul %120, %102, %cst_50 {dimension_numbers = #tpu.dot_dimension_numbers<[1], [0], [0], [1], [0, 0, 1, 1], [], []>} : vector<8x8xbf16>, vector<8x32xbf16>, vector<8x32xf32> -> vector<8x32xf32>
    %cst_51 = arith.constant dense<0.000000e+00> : vector<8xf32>
    %122 = vector.multi_reduction <add>, %121, %cst_51 [1] : vector<8x32xf32> to vector<8xf32>
    %123 = vector.shape_cast %122 : vector<8xf32> to vector<8x1xf32>
    %cst_52 = arith.constant 3.200000e+01 : f32
    %124 = vector.broadcast %cst_52 : f32 to vector<8x1xf32>
    %125 = arith.divf %123, %124 : vector<8x1xf32>
    %126 = vector.broadcast %125 : vector<8x1xf32> to vector<8x32xf32>
    %127 = arith.subf %121, %126 : vector<8x32xf32>
    %128 = arith.mulf %127, %127 : vector<8x32xf32>
    %cst_53 = arith.constant dense<0.000000e+00> : vector<8xf32>
    %129 = vector.multi_reduction <add>, %128, %cst_53 [1] : vector<8x32xf32> to vector<8xf32>
    %130 = vector.shape_cast %129 : vector<8xf32> to vector<8x1xf32>
    %cst_54 = arith.constant 3.200000e+01 : f32
    %131 = vector.broadcast %cst_54 : f32 to vector<8x1xf32>
    %132 = arith.divf %130, %131 : vector<8x1xf32>
    %cst_55 = arith.constant 9.99999974E-6 : f32
    %133 = vector.broadcast %cst_55 : f32 to vector<8x1xf32>
    %134 = arith.addf %132, %133 : vector<8x1xf32>
    %135 = math.rsqrt %134 : vector<8x1xf32>
    %136 = vector.broadcast %135 : vector<8x1xf32> to vector<8x32xf32>
    %137 = arith.mulf %127, %136 : vector<8x32xf32>
    %138 = vector.broadcast %7 : vector<1x32xf32> to vector<8x32xf32>
    %139 = arith.mulf %137, %138 : vector<8x32xf32>
    %140 = vector.broadcast %10 : vector<1x32xf32> to vector<8x32xf32>
    %141 = arith.addf %139, %140 : vector<8x32xf32>
    %142 = arith.index_cast %12 : i32 to index
    %c48 = arith.constant 48 : index
    %143 = vector.load %arg12[%142, %c48] : memref<8x64xbf16, #tpu.memory_space<vmem>>, vector<8x16xbf16>
    %c0_56 = arith.constant 0 : index
    %c48_57 = arith.constant 48 : index
    %144 = vector.load %arg13[%c0_56, %c48_57] : memref<8x64xbf16, #tpu.memory_space<vmem>>, vector<8x16xbf16>
    %c0_58 = arith.constant 0 : index
    %c96 = arith.constant 96 : index
    %145 = vector.load %arg14[%c0_58, %c96] : memref<8x128xbf16, #tpu.memory_space<vmem>>, vector<8x32xbf16>
    %146 = tpu.transpose %144, [1, 0] : vector<8x16xbf16> -> vector<16x8xbf16>
    %cst_59 = arith.constant dense<0.000000e+00> : vector<8x8xf32>
    %147 = tpu.matmul %143, %146, %cst_59 {dimension_numbers = #tpu.dot_dimension_numbers<[1], [0], [0], [1], [0, 0, 1, 1], [], []>} : vector<8x16xbf16>, vector<16x8xbf16>, vector<8x8xf32> -> vector<8x8xf32>
    %cst_60 = arith.constant dense<0xFF800000> : vector<8xf32>
    %148 = vector.multi_reduction <maximumf>, %147, %cst_60 [1] : vector<8x8xf32> to vector<8xf32>
    %149 = vector.shape_cast %148 : vector<8xf32> to vector<8x1xf32>
    %150 = vector.broadcast %149 : vector<8x1xf32> to vector<8x8xf32>
    %151 = arith.subf %147, %150 : vector<8x8xf32>
    %152 = math.exp %151 : vector<8x8xf32>
    %cst_61 = arith.constant dense<0.000000e+00> : vector<8xf32>
    %153 = vector.multi_reduction <add>, %152, %cst_61 [1] : vector<8x8xf32> to vector<8xf32>
    %154 = vector.shape_cast %153 : vector<8xf32> to vector<8x1xf32>
    %155 = tpu.reciprocal %154 {approx = true} : vector<8x1xf32> -> vector<8x1xf32>
    %156 = vector.broadcast %0 : f32 to vector<8x1xf32>
    %157 = arith.mulf %155, %156 : vector<8x1xf32>
    %158 = vector.broadcast %157 : vector<8x1xf32> to vector<8x8xf32>
    %159 = arith.mulf %152, %158 : vector<8x8xf32>
    %c0_62 = arith.constant 0 : index
    %c3 = arith.constant 3 : index
    %c0_63 = arith.constant 0 : index
    %c0_64 = arith.constant 0 : index
    %160 = vector.load %arg11[%c0_62, %c3, %c0_63, %c0_64] : memref<1x4x8x8xf32, #tpu.memory_space<vmem>>, vector<1x1x8x8xf32>
    %161 = vector.shape_cast %160 : vector<1x1x8x8xf32> to vector<8x8xf32>
    %162 = vector.shape_cast %159 : vector<8x8xf32> to vector<1x1x8x8xf32>
    tpu.vector_store %arg11[%c0_62, %c3, %c0_63, %c0_64], %162 {strides = array<i32>} : memref<1x4x8x8xf32, #tpu.memory_space<vmem>>, vector<1x1x8x8xf32>,
    %163 = arith.truncf %159 : vector<8x8xf32> to vector<8x8xbf16>
    %cst_65 = arith.constant dense<0.000000e+00> : vector<8x32xf32>
    %164 = tpu.matmul %163, %145, %cst_65 {dimension_numbers = #tpu.dot_dimension_numbers<[1], [0], [0], [1], [0, 0, 1, 1], [], []>} : vector<8x8xbf16>, vector<8x32xbf16>, vector<8x32xf32> -> vector<8x32xf32>
    %cst_66 = arith.constant dense<0.000000e+00> : vector<8xf32>
    %165 = vector.multi_reduction <add>, %164, %cst_66 [1] : vector<8x32xf32> to vector<8xf32>
    %166 = vector.shape_cast %165 : vector<8xf32> to vector<8x1xf32>
    %cst_67 = arith.constant 3.200000e+01 : f32
    %167 = vector.broadcast %cst_67 : f32 to vector<8x1xf32>
    %168 = arith.divf %166, %167 : vector<8x1xf32>
    %169 = vector.broadcast %168 : vector<8x1xf32> to vector<8x32xf32>
    %170 = arith.subf %164, %169 : vector<8x32xf32>
    %171 = arith.mulf %170, %170 : vector<8x32xf32>
    %cst_68 = arith.constant dense<0.000000e+00> : vector<8xf32>
    %172 = vector.multi_reduction <add>, %171, %cst_68 [1] : vector<8x32xf32> to vector<8xf32>
    %173 = vector.shape_cast %172 : vector<8xf32> to vector<8x1xf32>
    %cst_69 = arith.constant 3.200000e+01 : f32
    %174 = vector.broadcast %cst_69 : f32 to vector<8x1xf32>
    %175 = arith.divf %173, %174 : vector<8x1xf32>
    %cst_70 = arith.constant 9.99999974E-6 : f32
    %176 = vector.broadcast %cst_70 : f32 to vector<8x1xf32>
    %177 = arith.addf %175, %176 : vector<8x1xf32>
    %178 = math.rsqrt %177 : vector<8x1xf32>
    %179 = vector.broadcast %178 : vector<8x1xf32> to vector<8x32xf32>
    %180 = arith.mulf %170, %179 : vector<8x32xf32>
    %181 = vector.broadcast %7 : vector<1x32xf32> to vector<8x32xf32>
    %182 = arith.mulf %180, %181 : vector<8x32xf32>
    %183 = vector.broadcast %10 : vector<1x32xf32> to vector<8x32xf32>
    %184 = arith.addf %182, %183 : vector<8x32xf32>
    %185 = tpu.concatenate %55, %98, %141, %184 in 1 : vector<8x32xf32>, vector<8x32xf32>, vector<8x32xf32>, vector<8x32xf32> -> vector<8x128xf32>
    %186 = arith.truncf %185 : vector<8x128xf32> to vector<8x128xbf16>
    %c0_71 = arith.constant 0 : index
    %c0_72 = arith.constant 0 : index
    %187 = vector.load %arg8[%c0_71, %c0_72] : memref<128x32xbf16, #tpu.memory_space<vmem>>, vector<128x32xbf16>
    %cst_73 = arith.constant dense<0.000000e+00> : vector<8x32xf32>
    %188 = tpu.matmul %186, %187, %cst_73 {dimension_numbers = #tpu.dot_dimension_numbers<[1], [0], [0], [1], [0, 0, 1, 1], [], []>} : vector<8x128xbf16>, vector<128x32xbf16>, vector<8x32xf32> -> vector<8x32xf32>
    %c0_74 = arith.constant 0 : index
    %c0_75 = arith.constant 0 : index
    %189 = vector.load %arg9[%c0_74, %c0_75] : memref<1x32xf32, #tpu.memory_space<vmem>>, vector<1x32xf32>
    %190 = vector.broadcast %189 : vector<1x32xf32> to vector<8x32xf32>
    %191 = arith.addf %188, %190 : vector<8x32xf32>
    %c0_76 = arith.constant 0 : index
    %c0_77 = arith.constant 0 : index
    %c0_78 = arith.constant 0 : index
    %192 = vector.load %arg10[%c0_76, %c0_77, %c0_78] : memref<1x8x32xf32, #tpu.memory_space<vmem>>, vector<1x8x32xf32>
    %193 = vector.shape_cast %192 : vector<1x8x32xf32> to vector<8x32xf32>
    %194 = vector.shape_cast %191 : vector<8x32xf32> to vector<1x8x32xf32>
    tpu.vector_store %arg10[%c0_76, %c0_77, %c0_78], %194 {strides = array<i32>} : memref<1x8x32xf32, #tpu.memory_space<vmem>>, vector<1x8x32xf32>,
    return
  }
  func.func @transform_0(%arg0: i32, %arg1: i32) -> (i32, i32) {
    %c0_i32 = arith.constant 0 : i32
    %c0_i32_0 = arith.constant 0 : i32
    %c0_i32_1 = arith.constant 0 : i32
    return %c0_i32, %c0_i32_0 : i32, i32
  }
  func.func @transform_1(%arg0: i32, %arg1: i32) -> (i32, i32, i32) {
    %c0_i32 = arith.constant 0 : i32
    %c0_i32_0 = arith.constant 0 : i32
    %c0_i32_1 = arith.constant 0 : i32
    return %arg0, %c0_i32, %c0_i32_0 : i32, i32, i32
  }
  func.func @transform_2(%arg0: i32, %arg1: i32) -> (i32, i32) {
    %c0_i32 = arith.constant 0 : i32
    %c0_i32_0 = arith.constant 0 : i32
    %c0_i32_1 = arith.constant 0 : i32
    return %c0_i32, %c0_i32_0 : i32, i32
  }
  func.func @transform_3(%arg0: i32, %arg1: i32) -> (i32, i32) {
    %c0_i32 = arith.constant 0 : i32
    %c0_i32_0 = arith.constant 0 : i32
    %c0_i32_1 = arith.constant 0 : i32
    return %c0_i32, %c0_i32_0 : i32, i32
  }
  func.func @transform_4(%arg0: i32, %arg1: i32) -> (i32, i32) {
    %c0_i32 = arith.constant 0 : i32
    %c0_i32_0 = arith.constant 0 : i32
    %c0_i32_1 = arith.constant 0 : i32
    return %c0_i32, %c0_i32_0 : i32, i32
  }
  func.func @transform_5(%arg0: i32, %arg1: i32) -> (i32, i32) {
    %c0_i32 = arith.constant 0 : i32
    %c0_i32_0 = arith.constant 0 : i32
    %c0_i32_1 = arith.constant 0 : i32
    return %c0_i32, %c0_i32_0 : i32, i32
  }
  func.func @transform_6(%arg0: i32, %arg1: i32) -> (i32, i32) {
    %c0_i32 = arith.constant 0 : i32
    %c0_i32_0 = arith.constant 0 : i32
    %c0_i32_1 = arith.constant 0 : i32
    return %c0_i32, %c0_i32_0 : i32, i32
  }
  func.func @transform_7(%arg0: i32, %arg1: i32) -> (i32, i32) {
    %c0_i32 = arith.constant 0 : i32
    %c0_i32_0 = arith.constant 0 : i32
    %c0_i32_1 = arith.constant 0 : i32
    return %c0_i32, %c0_i32_0 : i32, i32
  }
  func.func @transform_8(%arg0: i32, %arg1: i32) -> (i32, i32, i32) {
    %c0_i32 = arith.constant 0 : i32
    %c0_i32_0 = arith.constant 0 : i32
    return %arg0, %arg1, %c0_i32 : i32, i32, i32
  }
  func.func @transform_9(%arg0: i32, %arg1: i32) -> (i32, i32, i32, i32) {
    %c0_i32 = arith.constant 0 : i32
    %c0_i32_0 = arith.constant 0 : i32
    %c0_i32_1 = arith.constant 0 : i32
    return %arg0, %c0_i32, %arg1, %c0_i32_0 : i32, i32, i32, i32
  }
}

</mosaic_0001>

<bundles_post_ra>
// kernel: tpu_custom_call.1
= control target key start
LH: loop header
LB: loop body
LE: loop exit
PB: predicated region body
PF: predicated region fallthrough
CT: control target
= control target key end

     0   :  { %s1770_s0 = inlined_call_operand.vmem [shape: f32[1,2], index: 0, kind: input, shape index: {}]   ;;  %s1771_s1 = inlined_call_operand.vmem [shape: f32[2,8,32], index: 1, kind: input, shape index: {}]   ;;  %s1772_s2 = inlined_call_operand.vmem [shape: bf16[32,256], index: 2, kind: input, shape index: {}]   ;;  %s1773_s3 = inlined_call_operand.vmem [shape: f32[1,256], index: 3, kind: input, shape index: {}]   ;;  %s1774_s4 = inlined_call_operand.vmem [shape: f32[1,32], index: 4, kind: input, shape index: {}]   ;;  %s1775_s5 = inlined_call_operand.vmem [shape: f32[1,32], index: 5, kind: input, shape index: {}]   ;;  %s1776_s6 = inlined_call_operand.vmem [shape: bf16[128,32], index: 6, kind: input, shape index: {}]   ;;  %s1777_s7 = inlined_call_operand.vmem [shape: f32[1,32], index: 7, kind: input, shape index: {}]   ;;  %s1778_s8 = inlined_call_operand.hbm [shape: f32[2,8,32], index: 8, kind: output, shape index: {0}]   ;;  %s1779_s9 = inlined_call_operand.hbm [shape: f32[2,4,8,8], index: 9, kind: output, shape index: {1}]  }
   0x1   :  { %1780 = sst [smem:[#allocation14_spill]] %s1770_s0 }
   0x2   :  { %1781 = sst [smem:[#allocation15_spill]] %s1771_s1 }
   0x3   :  { %1782 = sst [smem:[#allocation16_spill]] %s1772_s2 }
   0x4   :  { %1783 = sst [smem:[#allocation17_spill]] %s1773_s3 }
   0x5   :  { %1784 = sst [smem:[#allocation18_spill]] %s1774_s4 }
   0x6   :  { %15 = vsyncpa [#allocation7], 0 }
   0x7   :  { %16 = vsyncpa [#allocation6], 0 }
   0x8   :  { %18 = vsyncpa [#allocation6 + $0x1], 0 }
   0x9   :  { %19 = vsyncpa [#allocation10], 0 }
   0xa   :  { %21 = vsyncpa [#allocation10 + $0x1], 0  ;;  %s1487_s30 = smov 0   ;;  %s1489_s10 = smov 0  }
   0xb   :  { %s1491_s11 = smov 0   ;;  %s1493_s12 = smov 0  }
   0xc   :  { %s1495_s13 = smov 0   ;;  %s1497_s14 = smov 0  }
   0xd LB: > { %s1099_s15 = sadd.s32 4294967295, %s1426_s14   ;;  %s1100_s16 = sadd.s32 4294967294, %s1426_s14   ;;  %s1426_s14 = sphi %s1497_s14, %s27_s14   ;;  %s1422_s13 = sphi %s1495_s13, %s1796_s13   ;;  %s1418_s12 = sphi %s1493_s12, %s1795_s12   ;;  %s1414_s11 = sphi %s1491_s11, %s1794_s11   ;;  %s1410_s10 = sphi %s1489_s10, %s1793_s10   ;;  %s1406_s30 = sphi %s1487_s30, %s1792_s30  }
   0xe   : > { %s39_s17 = sadd.s32 1, %s1422_s13  ;;  %s221_s18 = sadd.s32 1, %s1414_s11 }
   0xf   : > { %p41_p0 = scmp.ge.s32.totalorder %s39_s17, 2  ;;  %p231_p1 = scmp.ne.s32.totalorder %s1414_s11, %s1410_s10 }
  0x10   : > { %p232_p2 = scmp.eq.s32.totalorder %s1099_s15, 1  ;;  %p237_p3 = scmp.ne.s32.totalorder %s1410_s10, %s1406_s30 }
  0x11   : > { %s1798_s17 = smov (%p41_p0, %s39_s17), 0  ;;  %p238_p5 = scmp.eq.s32.totalorder %s1100_s16, 1 }
  0x12   : > { %p1527_p4 = por %p232_p2, %p231_p1  ;;  %s216_s20 = ssub.s32 %s1422_s13, %s1798_s17 }
  0x13   : > { %p1101_p6 = scmp.ge.s32.totalorder %s1426_s14, 1  ;;  %p219_p7 = scmp.eq.s32.totalorder %s216_s20, 0 }
  0x14   : > { %p1534_p8 = por %p238_p5, %p237_p3  ;;  %p273_p9 = scmp.lt.s32.totalorder %s1426_s14, 3 }
  0x15   : > { %s1540_s22 = scalar_select %p219_p7, %s1414_s11, %s221_s18  }
  0x16   : > { %p274_p10 = pnand %p1101_p6, %p273_p9  ;;  %p1210_p11 = scmp.eq.s32.totalorder %s1099_s15, 0 }
  0x17   : > { %s1787_s0 = sld [smem:[#allocation14_spill]]  ;;  %s1428_s26 = smov [#allocation5]  }
  0x18   : > { %p1199_p12 = pneg %p274_p10 }
  0x1a   : > { %p1200_p13 = pnand %p1210_p11, %p1199_p12  ;;  %323 = sbr.rel (%p274_p10) target bundleno = 1787 (0x6fb), region = 52 }
  0x1d   : > { %s285_s25 = sshll.u32 %s1787_s0, 4  ;;  %s286_s25 = int_to_ptr.vmem [resolvable:$true] %s285_s25 }
  0x1e   : > { %1202 = dma.vmem_to_smem (!%p1200_p13), %s286_s25, 16, %s1428_s26, [#allocation7]  }
  0x1f   : > { %1393 = dma.done.wait (%p1210_p11), [#allocation7], 16  }
  0x20   : > { %1395 = vsyncadd (%p1210_p11), [#allocation7], 4294967280 }
  0x21   : > { %330 = sfence }
  0x22   : > { %s1788_s2 = sld [smem:[#allocation16_spill]]  ;;  %p365_p0 = scmp.lt.s32.totalorder %s1418_s12, 1  ;;  %vm408_vm0 = vcmask 261120   ;;  %vm440_vm1 = vcmask 519168   ;;  %vm463_vm2 = vcmask 130048   ;;  %vm502_vm3 = vcmask 1043456  }
  0x23   : > { %s1789_s1 = sld [smem:[#allocation15_spill]]  ;;  %s1430_s29 = smov 112   ;;  %vm483_vm4 = vcmask 64512  }
  0x24   : > { %s366_s24 = scalar_select %p365_p0, %s1418_s12, 1 }
  0x25   : > { %s1790_s3 = sld [smem:[#allocation17_spill]]  ;;  %s1431_s15 = smov 96  }
  0x26   : > { %s1108_s25 = sshll.u32 %s366_s24, 3  ;;  %s1432_s16 = smov 80  }
  0x27   : > { %s370_s18 = sld [smem:[#allocation5]]  ;;  %s1598_s20 = sand.u32 1, %s1410_s10  }
  0x28   : > { %v1120_v0 = vld [vmem:[%s1788_s2 + $0x10] sm:$0xf]  ;;  %v1181_v1 = vld [vmem:[%s1788_s2 + $0x14] sm:$0xf0]  ;;  %v1112_v2 = vld [vmem:[%s1788_s2] sm:$0xf] }
  0x29   : > { %v1121_v3 = vor.u32 %v1181_v1, %v1120_v0  ;;  %v1179_v4 = vld [vmem:[%s1788_s2 + $0x4] sm:$0xf0]  ;;  %s368_s28 = scalar_lea.vmem %s1789_s1, %s1108_s25  ;;  %v1180_v8 = vld [vmem:[%s1788_s2 + $0x14] sm:$0xf]  ;;  %v1122_v9 = vld [vmem:[%s1788_s2 + $0x18] sm:$0xf0] }
  0x2a   : > { %v1113_v5 = vor.u32 %v1179_v4, %v1112_v2  ;;  %v376_v6 = vld [vmem:[%s368_s28] sm:$0xff]  ;;  %v1125_v11 = vor.u32 %v1180_v8, %v1122_v9  ;;  %v1114_v12 = vld [vmem:[%s1788_s2 + $0x8] sm:$0xf0]  ;;  %s1429_s28 = smov 64   ;;  %s1107_s23 = sshll.u32 %s1598_s20, 5 }
  0x2b   : > { %418 = vmatpush.bf16.msra.mxu0 %v1121_v3  ;;  %v377_v7 = vpack.c.bf16 %v376_v6, %v376_v6  ;;  %v1178_v10 = vld [vmem:[%s1788_s2 + $0x4] sm:$0xf]  ;;  %v382_v14 = vld [vmem:[%s1790_s3] sm:$0x3]  ;;  %s1604_s24 = scalar_lea.vmem [#allocation9], %s1107_s23  ;;  %s1434_s25 = smov 32  }
  0x2c   : > { %431 = vmatpush.bf16.msra.mxu2 %v1125_v11  ;;  %v1117_v13 = vor.u32 %v1178_v10, %v1114_v12  ;;  %v384_v15 = vperm.slane %v382_v14, 0  ;;  %v385_v41 = vperm.slane %v382_v14, 1  ;;  %s1109_s26 = sld [smem:[#allocation5 + $0x1]]  ;;  %s1332_s2 = scalar_lea.hbm %s1779_s9, 64 }
  0x2d   : > { %s1791_s4 = sld [smem:[#allocation18_spill]] }
  0x2f   : > { %419 = vmatpush.bf16.msra.mxu0 %v1113_v5 }
  0x30   : > { %432 = vmatpush.bf16.msra.mxu2 %v1117_v13 }
  0x32   : > { %1126 = vmatmul.msk.bf16.vlgmr.msra.gmra.mxu0 %vm408_vm0, %v377_v7 }
  0x33   : > { %1127 = vmatmul.msk.bf16.vlgmr.msra.gmra.mxu2 %vm408_vm0, %v377_v7 }
  0xaf   : > { %v421_v16 = vpop.f32.mrf.mxu0 }
  0xb0   : > { %v422_v17 = vadd.f32 %v421_v16, %v384_v15  ;;  %v1600_v15 = vstv %s370_s18 }
  0xb2   : > { %v438_v18 = vmul.f32 0.17677669, %v422_v17  ;;  %v442_v19 = vpack.c.bf16 %v422_v17, %v422_v17 }
  0xb4   : > { %v439_v20 = vpack.c.bf16 %v438_v18, %v438_v18  ;;  %444 = vrot.lane.b32.xlu0 %v442_v19, %s1429_s28 }
  0xb6   : > { %441 = vst.msk [vmem:[#allocation2] sm:$0xf] %vm440_vm1, %v439_v20  ;;  %v434_v42 = vpop.f32.mrf.mxu2 }
  0xb7   : > { %v423_v21 = vpop.f32.mrf.mxu0  ;;  %v435_v43 = vadd.f32 %v434_v42, %v385_v41 }
  0xb9   : > { %v448_v44 = vpack.c.bf16 %v435_v43, %v435_v43 }
  0xbb   : > { %449 = vst [vmem:[#allocation4] sm:$0xf] %v448_v44 }
  0xbd   : > { %v557_v22 = vld [vmem:[#allocation2] sm:$0xf] }
  0xbe   : > { %v561_v23 = vunpack.c.l.b16 %v557_v22  ;;  %v460_v33 = vld [vmem:[#allocation2] sm:$0xf]  ;;  %v436_v46 = vpop.f32.mrf.mxu2 }
  0xbf   : > { %v652_v35 = vld [vmem:[#allocation2] sm:$0xf] }
  0xc0   : > { %v562_v24 = vpack.c.b16 %v561_v23, %v561_v23  ;;  %v656_v36 = vunpack.c.l.b16 %v652_v35  ;;  %v747_v38 = vld [vmem:[#allocation2] sm:$0xf] }
  0xc1   : > { %v751_v39 = vunpack.c.l.b16 %v747_v38 }
  0xc2   : > { %563 = vrot.lane.b32.xlu2 %v562_v24, %s1430_s29  ;;  %v657_v37 = vpack.c.b16 %v656_v36, %v656_v36  ;;  %v462_v47 = vld [vmem:[#allocation4] sm:$0xf] }
  0xc3   : > { %v752_v40 = vpack.c.b16 %v751_v39, %v751_v39  ;;  %v504_v48 = vsel %vm502_vm3, %v462_v47, 0  ;;  %v654_v59 = vld [vmem:[#allocation4] sm:$0xf] }
  0xc4   : > { %513 = vmatpush.bf16.msra.mxu3 %v504_v48  ;;  %v700_v61 = vunpack.c.l.b16 %v654_v59  ;;  %v559_v47 = vld [vmem:[#allocation4] sm:$0xf] }
  0xc6   : > { %v701_v0 = vpack.c.b16 %v700_v61, %v700_v61 }
 0x11c   : > { %v1585_v45 = vpop.permute.xlu2 %563 }
 0x126   : > { %v445_v25 = vpop.permute.xlu0 %444 }
 0x127   : > { %447 = vst.msk [vmem:[#allocation3] sm:$0xf] %vm440_vm1, %v445_v25 }
 0x12e   : > { %v461_v26 = vld [vmem:[#allocation3] sm:$0xf] }
 0x12f   : > { %v653_v27 = vld [vmem:[#allocation3] sm:$0xf]  ;;  %v468_v28 = vsel %vm463_vm2, %v461_v26, 0 }
 0x130   : > { %v661_v29 = vunpack.c.l.b16 %v653_v27  ;;  %477 = vmatpush.bf16.xpose.msrb.mxu2 %v468_v28  ;;  %v748_v31 = vld [vmem:[#allocation3] sm:$0xf] }
 0x131   : > { %v756_v32 = vunpack.c.l.b16 %v748_v31  ;;  %v558_v3 = vld [vmem:[#allocation3] sm:$0xf] }
 0x132   : > { %v662_v30 = vpack.c.b16 %v661_v29, %v661_v29  ;;  %v566_v4 = vunpack.c.l.b16 %v558_v3 }
 0x133   : > { %v757_v34 = vpack.c.b16 %v756_v32, %v756_v32 }
 0x134   : > { %663 = vrot.lane.b32.xlu2 %v662_v30, %s1431_s15  ;;  %v567_v5 = vpack.c.b16 %v566_v4, %v566_v4 }
 0x137   : > { %1128 = vmatmul.msk.bf16.vlgmr.msrb.gmra.mxu2 %vm463_vm2, %v460_v33 }
 0x13c   : > { %758 = vrot.lane.b32.xlu2 %v757_v34, %s1432_s16 }
 0x144   : > { %658 = vrot.lane.b32.xlu2 %v657_v37, %s1431_s15 }
 0x14c   : > { %753 = vrot.lane.b32.xlu2 %v752_v40, %s1432_s16 }
 0x18e   : > { %v664_v49 = vpop.permute.xlu2 %663 }
 0x18f   : > { %v669_v50 = vsel %vm463_vm2, %v664_v49, 0  ;;  %v605_v49 = vunpack.c.l.b16 %v559_v47 }
 0x190   : > { %678 = vmatpush.bf16.xpose.msra.mxu1 %v669_v50 }
 0x196   : > { %v759_v51 = vpop.permute.xlu2 %758 }
 0x197   : > { %v764_v22 = vsel %vm463_vm2, %v759_v51, 0  ;;  %v606_v51 = vpack.c.b16 %v605_v49, %v605_v49  ;;  %v451_v49 = vstv %s1109_s26 }
 0x19e   : > { %v659_v52 = vpop.permute.xlu2 %658 }
 0x19f   : > { %1133 = vmatmul.msk.bf16.vlgmr.msra.gmra.mxu1 %vm463_vm2, %v659_v52  ;;  %v749_v52 = vld [vmem:[#allocation4] sm:$0xf] }
 0x1a6   : > { %v754_v6 = vpop.permute.xlu2 %753 }
 0x1ba   : > { %v479_v53 = vpop.f32.mrf.mxu2 }
 0x1bb   : > { %v484_v54 = vsel %vm483_vm4, %v479_v53, -inf }
 0x1bc   : > { %485 = vmax.xlane.f32.xlu0 %v484_v54  ;;  %v1433_v54 = vmov 32.0  }
 0x1c2   : > { %v481_v55 = vpop.f32.mrf.mxu2 }
 0x21c   : > { %v680_v56 = vpop.f32.mrf.mxu1 }
 0x21d   : > { %v684_v57 = vsel %vm483_vm4, %v680_v56, -inf }
 0x21e   : > { %685 = vmax.xlane.f32.xlu2 %v684_v57 }
 0x224   : > { %v682_v58 = vpop.f32.mrf.mxu1 }
 0x22f   : > { %v486_v60 = vpop.xlane.xlu0 %485 }
 0x230   : > { %v487_v62 = vsub.f32 %v479_v53, %v486_v60  ;;  %v795_v53 = vunpack.c.l.b16 %v749_v52  ;;  %v453_v52 = vld [vmem:[%s1775_s5] sm:$0x1] }
 0x232   : > { %v488_v63 = vmul.f32 1.442695, %v487_v62  ;;  %v796_v55 = vpack.c.b16 %v795_v53, %v795_v53  ;;  %v454_v53 = vmul.f32 %v453_v52, %v451_v49 }
 0x234   : > { %1271 = vpow2.f32 %v488_v63 }
 0x236   : > { %702 = vrot.lane.b32.xlu2 %v701_v0, %s1429_s28 }
 0x23a   : > { %v1272_v1 = vpop.eup %1271 }
 0x23b   : > { %v490_v2 = vsel %vm483_vm4, %v1272_v1, 0.0 }
 0x23c   : > { %491 = vadd.xlane.f32.xlu1 %v490_v2 }
 0x255   : > { %568 = vrot.lane.b32.xlu1 %v567_v5, %s1430_s29  ;;  %s1190_s29 = sshll.u32 %s1418_s12, 5 }
 0x291   : > { %v686_v7 = vpop.xlane.xlu2 %685 }
 0x292   : > { %v687_v8 = vsub.f32 %v680_v56, %v686_v7 }
 0x294   : > { %v688_v9 = vmul.f32 1.442695, %v687_v8 }
 0x296   : > { %1273 = vpow2.f32 %v688_v9 }
 0x299   : > { %v703_v10 = vpop.permute.xlu2 %702 }
 0x29a   : > { %v708_v11 = vsel %vm502_vm3, %v703_v10, 0 }
 0x29b   : > { %717 = vmatpush.bf16.msra.mxu2 %v708_v11 }
 0x29c   : > { %v1274_v12 = vpop.eup %1273 }
 0x29d   : > { %v690_v13 = vsel %vm483_vm4, %v1274_v12, 0.0 }
 0x29e   : > { %691 = vadd.xlane.f32.xlu0 %v690_v13 }
 0x2af   : > { %v492_v14 = vpop.xlane.xlu1 %491 }
 0x2b0   : > { %1275 = vrcp.f32 %v492_v14 }
 0x2b6   : > { %v1276_v16 = vpop.eup %1275 }
 0x2b7   : > { %v495_v17 = vmul.f32 %v1276_v16, %v1600_v15 }
 0x2b9   : > { %v496_v18 = vmul.f32 %v1272_v1, %v495_v17 }
 0x2bb   : > { %v498_v19 = vpack.c.bf16 %v496_v18, %v496_v18  ;;  %497 = vst.msk [vmem:[%s1604_s24] sm:$0xff] %vm483_vm4, %v496_v18 }
 0x2bd   : > { %1129 = vmatmul.msk.bf16.vlgmr.msra.gmra.mxu3 %vm483_vm4, %v498_v19 }
 0x2c7   : > { %v569_v20 = vpop.permute.xlu1 %568 }
 0x2c8   : > { %v574_v21 = vsel %vm463_vm2, %v569_v20, 0 }
 0x2c9   : > { %583 = vmatpush.bf16.xpose.msrb.mxu3 %v574_v21 }
 0x2d0   : > { %1130 = vmatmul.msk.bf16.vlgmr.msrb.gmra.mxu3 %vm463_vm2, %v1585_v45 }
 0x2d1   : > { %773 = vmatpush.bf16.xpose.msra.mxu3 %v764_v22 }
 0x2e0   : > { %1136 = vmatmul.msk.bf16.vlgmr.msra.gmra.mxu3 %vm463_vm2, %v754_v6 }
 0x311   : > { %v692_v23 = vpop.xlane.xlu0 %691 }
 0x312   : > { %1277 = vrcp.f32 %v692_v23 }
 0x318   : > { %v1278_v24 = vpop.eup %1277 }
 0x319   : > { %v694_v25 = vmul.f32 %v1278_v24, %v1600_v15 }
 0x31b   : > { %v695_v26 = vmul.f32 %v1274_v12, %v694_v25 }
 0x31d   : > { %v698_v27 = vpack.c.bf16 %v695_v26, %v695_v26  ;;  %1134 = vst.msk [vmem:[%s1604_s24 + $0x10] sm:$0xff] %vm483_vm4, %v695_v26 }
 0x31f   : > { %1135 = vmatmul.msk.bf16.vlgmr.msra.gmra.mxu2 %vm483_vm4, %v698_v27 }
 0x340   : > { %v1618_v28 = vpop.f32.mrf.mxu3 }
 0x348   : > { %v517_v29 = vpop.f32.mrf.mxu3 }
 0x353   : > { %v585_v30 = vpop.f32.mrf.mxu3 }
 0x354   : > { %v589_v31 = vsel %vm483_vm4, %v585_v30, -inf }
 0x355   : > { %590 = vmax.xlane.f32.xlu1 %v589_v31 }
 0x35b   : > { %v587_v32 = vpop.f32.mrf.mxu3 }
 0x363   : > { %v775_v33 = vpop.f32.mrf.mxu3 }
 0x364   : > { %v779_v34 = vsel %vm483_vm4, %v775_v33, -inf }
 0x365   : > { %780 = vmax.xlane.f32.xlu0 %v779_v34 }
 0x36b   : > { %v777_v35 = vpop.f32.mrf.mxu3 }
 0x3a2   : > { %v719_v36 = vpop.f32.mrf.mxu2 }
 0x3a3   : > { %v723_v37 = vsel %vm408_vm0, %v719_v36, 0.0 }
 0x3a4   : > { %724 = vadd.xlane.f32.xlu2 %v723_v37 }
 0x3aa   : > { %v721_v38 = vpop.f32.mrf.mxu2 }
 0x3c8   : > { %v591_v39 = vpop.xlane.xlu1 %590 }
 0x3c9   : > { %v592_v40 = vsub.f32 %v585_v30, %v591_v39 }
 0x3cb   : > { %v593_v41 = vmul.f32 1.442695, %v592_v40 }
 0x3cd   : > { %1279 = vpow2.f32 %v593_v41 }
 0x3d3   : > { %v1280_v42 = vpop.eup %1279 }
 0x3d4   : > { %v595_v43 = vsel %vm483_vm4, %v1280_v42, 0.0 }
 0x3d5   : > { %596 = vadd.xlane.f32.xlu0 %v595_v43 }
 0x3d8   : > { %v781_v44 = vpop.xlane.xlu0 %780 }
 0x3d9   : > { %v782_v45 = vsub.f32 %v775_v33, %v781_v44 }
 0x3db   : > { %v783_v46 = vmul.f32 1.442695, %v782_v45 }
 0x3dd   : > { %1281 = vpow2.f32 %v783_v46 }
 0x3de   : > { %1283 = vrcp.f32 %v1433_v54 }
 0x3e3   : > { %v1282_v48 = vpop.eup %1281 }
 0x3e4   : > { %v785_v50 = vsel %vm483_vm4, %v1282_v48, 0.0  ;;  %v1284_v56 = vpop.eup %1283 }
 0x3e5   : > { %786 = vadd.xlane.f32.xlu1 %v785_v50  ;;  %v524_v57 = vmul.f32 32.0, %v1284_v56  ;;  %vm528_vm5 = vweird.f32 %v1284_v56 }
 0x3e7   : > { %v525_v58 = vsub.f32 1.0, %v524_v57 }
 0x3e9   : > { %607 = vrot.lane.b32.xlu0 %v606_v51, %s1431_s15  ;;  %v526_v59 = vmul.f32 %v1284_v56, %v525_v58 }
 0x3eb   : > { %v527_v60 = vadd.f32 %v1284_v56, %v526_v59 }
 0x3ed   : > { %v1627_v61 = vsel %vm528_vm5, %v1284_v56, %v527_v60  ;;  %v1670_v56 = vperm.slane %v454_v53, 0 }
 0x3fe   : > { %797 = vrot.lane.b32.xlu1 %v796_v55, %s1434_s25 }
 0x417   : > { %v725_v62 = vpop.xlane.xlu2 %724 }
 0x418   : > { %v726_v63 = vmul.f32 %v725_v62, %v1627_v61 }
 0x41a   : > { %v1630_v0 = vsub.f32 %v719_v36, %v726_v63 }
 0x41c   : > { %v728_v1 = vmul.f32 %v1630_v0, %v1630_v0 }
 0x41e   : > { %v729_v2 = vsel %vm408_vm0, %v728_v1, 0.0 }
 0x41f   : > { %730 = vadd.xlane.f32.xlu2 %v729_v2 }
 0x448   : > { %v597_v3 = vpop.xlane.xlu0 %596 }
 0x449   : > { %1285 = vrcp.f32 %v597_v3 }
 0x44f   : > { %v1286_v4 = vpop.eup %1285 }
 0x450   : > { %v599_v5 = vmul.f32 %v1286_v4, %v1600_v15 }
 0x452   : > { %v600_v6 = vmul.f32 %v1280_v42, %v599_v5 }
 0x454   : > { %1131 = vst.msk [vmem:[%s1604_s24 + $0x8] sm:$0xff] %vm483_vm4, %v600_v6  ;;  %v603_v10 = vpack.c.bf16 %v600_v6, %v600_v6 }
 0x458   : > { %v787_v7 = vpop.xlane.xlu1 %786 }
 0x459   : > { %1287 = vrcp.f32 %v787_v7 }
 0x45b   : > { %v608_v8 = vpop.permute.xlu0 %607 }
 0x45c   : > { %v613_v9 = vsel %vm502_vm3, %v608_v8, 0 }
 0x45d   : > { %622 = vmatpush.bf16.msrb.mxu0 %v613_v9 }
 0x45f   : > { %v1288_v11 = vpop.eup %1287 }
 0x460   : > { %v789_v12 = vmul.f32 %v1288_v11, %v1600_v15  ;;  %1132 = vmatmul.msk.bf16.vlgmr.msrb.gmra.mxu0 %vm483_vm4, %v603_v10  ;;  %v520_v15 = vsel %vm408_vm0, %v1618_v28, 0.0 }
 0x462   : > { %v790_v13 = vmul.f32 %v1282_v48, %v789_v12  ;;  %v450_v48 = vld [vmem:[%s1791_s4] sm:$0x1] }
 0x463   : > { %v452_v50 = vmul.f32 %v451_v49, %v450_v48 }
 0x464   : > { %1137 = vst.msk [vmem:[%s1604_s24 + $0x18] sm:$0xff] %vm483_vm4, %v790_v13  ;;  %v793_v17 = vpack.c.bf16 %v790_v13, %v790_v13 }
 0x465   : > { %v1667_v54 = vperm.slane %v452_v50, 0 }
 0x470   : > { %v798_v14 = vpop.permute.xlu1 %797 }
 0x471   : > { %v803_v16 = vsel %vm502_vm3, %v798_v14, 0  ;;  %vm855_vm3 = vcmask 523264  }
 0x472   : > { %812 = vmatpush.bf16.msra.mxu0 %v803_v16 }
 0x475   : > { %1138 = vmatmul.msk.bf16.vlgmr.msra.gmra.mxu0 %vm483_vm4, %v793_v17  ;;  %vm857_vm4 = vcmask 785408  }
 0x492   : > { %v731_v25 = vpop.xlane.xlu2 %730 }
 0x493   : > { %v732_v29 = vmul.f32 %v731_v25, %v1627_v61  ;;  %v1186_v25 = vld [vmem:[%s1776_s6 + $0x20] sm:$0xff] }
 0x495   : > { %v733_v32 = vadd.f32 1e-05, %v732_v29 }
 0x497   : > { %1289 = vrsqrt.f32 %v733_v32  ;;  %vm740_vm7 = vweird.f32 %v733_v32 }
 0x49d   : > { %v1290_v38 = vpop.eup %1289 }
 0x49e   : > { %v735_v39 = vmul.f32 %v1290_v38, %v733_v32  ;;  %vm741_vm6 = vweird.f32 %v1290_v38 }
 0x49f   : > { %vm742_vm8 = vmor %vm740_vm7, %vm741_vm6 }
 0x4a0   : > { %v736_v43 = vmul.f32 %v1290_v38, %v735_v39 }
 0x4a2   : > { %v737_v46 = vmul.f32 0.5, %v736_v43 }
 0x4dd   : > { %v624_v18 = vpop.f32.mrf.mxu0 }
 0x4de   : > { %v628_v19 = vsel %vm408_vm0, %v624_v18, 0.0 }
 0x4df   : > { %629 = vadd.xlane.f32.xlu0 %v628_v19 }
 0x4e5   : > { %v626_v20 = vpop.f32.mrf.mxu0 }
 0x4e7   : > { %521 = vadd.xlane.f32.xlu0 %v520_v15 }
 0x4f2   : > { %v814_v21 = vpop.f32.mrf.mxu0 }
 0x4f3   : > { %v818_v22 = vsel %vm408_vm0, %v814_v21, 0.0 }
 0x4f4   : > { %819 = vadd.xlane.f32.xlu1 %v818_v22  ;;  %v1189_v22 = vld [vmem:[%s1776_s6 + $0x38] sm:$0xff] }
 0x4f5   : > { %928 = vmatpush.bf16.msrb.mxu1 %v1189_v22 }
 0x4fa   : > { %v816_v23 = vpop.f32.mrf.mxu0 }
 0x4fb   : > { %v1188_v23 = vld [vmem:[%s1776_s6 + $0x30] sm:$0xff] }
 0x4fc   : > { %929 = vmatpush.bf16.msrb.mxu1 %v1188_v23 }
 0x552   : > { %v630_v24 = vpop.xlane.xlu0 %629 }
 0x553   : > { %v631_v26 = vmul.f32 %v630_v24, %v1627_v61  ;;  %v1187_v24 = vld [vmem:[%s1776_s6 + $0x28] sm:$0xff] }
 0x554   : > { %930 = vmatpush.bf16.msrb.mxu1 %v1187_v24 }
 0x555   : > { %v632_v27 = vsub.f32 %v624_v18, %v631_v26  ;;  %v1185_v26 = vld [vmem:[%s1776_s6 + $0x18] sm:$0xff] }
 0x557   : > { %v633_v30 = vmul.f32 %v632_v27, %v632_v27 }
 0x558   : > { %931 = vmatpush.bf16.msrb.mxu1 %v1186_v25 }
 0x559   : > { %v634_v31 = vsel %vm408_vm0, %v633_v30, 0.0  ;;  %v1183_v30 = vld [vmem:[%s1776_s6 + $0x8] sm:$0xff] }
 0x55a   : > { %635 = vadd.xlane.f32.xlu0 %v634_v31  ;;  %v522_v33 = vpop.xlane.xlu0 %521 }
 0x55b   : > { %v530_v34 = vmul.f32 %v1627_v61, %v522_v33 }
 0x55c   : > { %932 = vmatpush.bf16.msrb.mxu1 %v1185_v26 }
 0x55d   : > { %v1654_v35 = vsub.f32 %v1618_v28, %v530_v34  ;;  %v738_v28 = vsub.f32 1.5, %v737_v46 }
 0x55f   : > { %v532_v36 = vmul.f32 %v1654_v35, %v1654_v35  ;;  %v739_v47 = vmul.f32 %v1290_v38, %v738_v28 }
 0x561   : > { %v533_v37 = vsel %vm408_vm0, %v532_v36, 0.0  ;;  %v743_v51 = vsel %vm742_vm8, %v1290_v38, %v739_v47 }
 0x562   : > { %534 = vadd.xlane.f32.xlu0 %v533_v37  ;;  %v744_v55 = vmul.f32 %v743_v51, %v1630_v0  ;;  %v1182_v37 = vld [vmem:[%s1776_s6] sm:$0xff] }
 0x564   : > { %v745_v57 = vmul.f32 %v744_v55, %v1667_v54 }
 0x566   : > { %v746_v58 = vadd.f32 %v745_v57, %v1670_v56 }
 0x567   : > { %v820_v40 = vpop.xlane.xlu1 %819 }
 0x568   : > { %v821_v41 = vmul.f32 %v820_v40, %v1627_v61 }
 0x56a   : > { %v822_v42 = vsub.f32 %v814_v21, %v821_v41 }
 0x56c   : > { %v823_v44 = vmul.f32 %v822_v42, %v822_v42 }
 0x56e   : > { %v824_v45 = vsel %vm408_vm0, %v823_v44, 0.0 }
 0x56f   : > { %825 = vadd.xlane.f32.xlu1 %v824_v45 }
 0x588   : > { %847 = vrot.lane.b32.xlu1 %v746_v58, %s1429_s28  ;;  %s976_s28 = sshll.u32 %s1604_s24, 4  ;;  %s977_s28 = int_to_ptr.vmem [resolvable:$true] %s976_s28 }
 0x5cd   : > { %v636_v59 = vpop.xlane.xlu0 %635 }
 0x5ce   : > { %v637_v60 = vmul.f32 %v636_v59, %v1627_v61 }
 0x5d0   : > { %v638_v62 = vadd.f32 1e-05, %v637_v60 }
 0x5d2   : > { %1291 = vrsqrt.f32 %v638_v62  ;;  %vm645_vm10 = vweird.f32 %v638_v62 }
 0x5d5   : > { %v535_v29 = vpop.xlane.xlu0 %534 }
 0x5d6   : > { %v536_v31 = vmul.f32 %v535_v29, %v1627_v61 }
 0x5d8   : > { %v1292_v63 = vpop.eup %1291  ;;  %v537_v32 = vadd.f32 1e-05, %v536_v31 }
 0x5d9   : > { %v640_v1 = vmul.f32 %v1292_v63, %v638_v62  ;;  %vm646_vm9 = vweird.f32 %v1292_v63 }
 0x5da   : > { %vm647_vm11 = vmor %vm645_vm10, %vm646_vm9  ;;  %vm544_vm1 = vweird.f32 %v537_v32 }
 0x5db   : > { %v641_v2 = vmul.f32 %v1292_v63, %v640_v1 }
 0x5dd   : > { %v642_v3 = vmul.f32 0.5, %v641_v2 }
 0x5df   : > { %v643_v4 = vsub.f32 1.5, %v642_v3 }
 0x5e1   : > { %v644_v0 = vmul.f32 %v1292_v63, %v643_v4 }
 0x5e2   : > { %v826_v5 = vpop.xlane.xlu1 %825 }
 0x5e3   : > { %v648_v6 = vsel %vm647_vm11, %v1292_v63, %v644_v0  ;;  %v827_v7 = vmul.f32 %v826_v5, %v1627_v61 }
 0x5e4   : > { %v649_v8 = vmul.f32 %v648_v6, %v632_v27  ;;  %v1184_v27 = vld [vmem:[%s1776_s6 + $0x10] sm:$0xff] }
 0x5e5   : > { %v828_v9 = vadd.f32 1e-05, %v827_v7  ;;  %933 = vmatpush.bf16.msrb.mxu1 %v1184_v27 }
 0x5e6   : > { %v650_v10 = vmul.f32 %v649_v8, %v1667_v54 }
 0x5e7   : > { %1293 = vrsqrt.f32 %v828_v9  ;;  %vm835_vm13 = vweird.f32 %v828_v9 }
 0x5e8   : > { %v651_v11 = vadd.f32 %v650_v10, %v1670_v56  ;;  %1295 = vrsqrt.f32 %v537_v32 }
 0x5e9   : > { %934 = vmatpush.bf16.msrb.mxu1 %v1183_v30 }
 0x5ea   : > { %843 = vrot.lane.b32.xlu2 %v651_v11, %s1434_s25  ;;  %s948_s25 = scalar_lea.sflag [#allocation10], %s1598_s20 }
 0x5ed   : > { %v1294_v12 = vpop.eup %1293  ;;  %935 = vmatpush.bf16.msrb.mxu1 %v1182_v37 }
 0x5ee   : > { %v830_v13 = vmul.f32 %v1294_v12, %v828_v9  ;;  %vm836_vm12 = vweird.f32 %v1294_v12  ;;  %v1296_v33 = vpop.eup %1295 }
 0x5ef   : > { %vm837_vm14 = vmor %vm835_vm13, %vm836_vm12  ;;  %v539_v34 = vmul.f32 %v1296_v33, %v537_v32  ;;  %vm545_vm15 = vweird.f32 %v1296_v33 }
 0x5f0   : > { %v831_v14 = vmul.f32 %v1294_v12, %v830_v13  ;;  %vm546_vm2 = vmor %vm544_vm1, %vm545_vm15 }
 0x5f1   : > { %v540_v36 = vmul.f32 %v1296_v33, %v539_v34 }
 0x5f2   : > { %v832_v16 = vmul.f32 0.5, %v831_v14 }
 0x5f3   : > { %v541_v38 = vmul.f32 0.5, %v540_v36 }
 0x5f4   : > { %v833_v17 = vsub.f32 1.5, %v832_v16 }
 0x5f5   : > { %v542_v39 = vsub.f32 1.5, %v541_v38 }
 0x5f6   : > { %v834_v18 = vmul.f32 %v1294_v12, %v833_v17 }
 0x5f7   : > { %v543_v40 = vmul.f32 %v1296_v33, %v542_v39 }
 0x5f8   : > { %v838_v19 = vsel %vm837_vm14, %v1294_v12, %v834_v18 }
 0x5f9   : > { %v839_v20 = vmul.f32 %v838_v19, %v822_v42  ;;  %v547_v41 = vsel %vm546_vm2, %v1296_v33, %v543_v40 }
 0x5fa   : > { %v548_v61 = vmul.f32 %v547_v41, %v1654_v35  ;;  %v848_v46 = vpop.permute.xlu1 %847 }
 0x5fb   : > { %v840_v15 = vmul.f32 %v839_v20, %v1667_v54 }
 0x5fc   : > { %v552_v42 = vmul.f32 %v1667_v54, %v548_v61 }
 0x5fd   : > { %v841_v21 = vadd.f32 %v840_v15, %v1670_v56 }
 0x5fe   : > { %v556_v44 = vadd.f32 %v1670_v56, %v552_v42 }
 0x5ff   : > { %851 = vrot.lane.b32.xlu0 %v841_v21, %s1431_s15  ;;  %s975_s15 = scalar_lea.hbm %s1779_s9, %s1190_s29 }
 0x600   : > { %s978_s23 = sshll.u32 %s975_s15, 4  ;;  %s979_s23 = int_to_ptr.hbm [resolvable:$true] %s978_s23 }
 0x601   : > { %s1326_s26 = sshra.s32 %s979_s23, 4  ;;  %s1327_s26 = int_to_ptr.hbm [resolvable:$true] %s1326_s26 }
 0x602   : > { %s1328_s0 = scalar_lea.hbm %s1327_s26, 32  ;;  %p1333_p5 = scmp.lt.s32.totalorder %s1327_s26, %s1779_s9 }
 0x603   : > { %p1329_p1 = scmp.ne.s32.totalorder %s1327_s26, %s1328_s0  ;;  %p1334_p6 = scmp.lt.s32.totalorder %s1332_s2, %s1328_s0 }
 0x605   : > { %p1330_p2 = pnand %p1329_p1, %p1527_p4  ;;  %p1335_p7 = por %p1334_p6, %p1333_p5 }
 0x607   : > { %p1331_p3 = pneg %p1330_p2 }
 0x609   : > { %p1336_p9 = pnand %p1335_p7, %p1331_p3 }
 0x644   : > { %v844_v43 = vpop.permute.xlu2 %843 }
 0x645   : > { %v854_v45 = vsel %vm408_vm0, %v556_v44, %v844_v43 }
 0x646   : > { %v856_v47 = vsel %vm855_vm3, %v854_v45, %v848_v46 }
 0x671   : > { %v852_v28 = vpop.permute.xlu0 %851 }
 0x672   : > { %v858_v48 = vsel %vm857_vm4, %v856_v47, %v852_v28 }
 0x673   : > { %v859_v49 = vpack.c.bf16 %v858_v48, %v858_v48 }
 0x675   : > { %936 = vmatmul.bf16.vlgmr.msrb.gmra.mxu1 %v859_v49 }
 0x676   : > { %1339 = shalt.err (!%p1336_p9)
}
 0x677   : > { %s1435_s24 = smov 128   ;;  %s1436_s29 = smov 8   ;;  %v1270_v35 = vld [vmem:[%s1777_s7] ss:$0 sm:$0xff] }
 0x678   : > { %1196 = dma.vmem_to_hbm [thread:$0]  (%p1527_p4), %s977_s28, 512, %s979_s23, %s948_s25, %s1435_s24, %s1435_s24, %s1436_s29  }
 0x679   : > { %s1173_s16 = sshll.u32 %s1418_s12, 3  ;;  %s1106_s18 = sshll.u32 %s1598_s20, 3 }
 0x67a   : > { %s959_s3 = scalar_lea.hbm %s1778_s8, %s1173_s16  ;;  %s357_s26 = scalar_lea.vmem [#allocation8], %s1106_s18 }
 0x67b   : > { %s961_s0 = sshll.u32 %s357_s26, 4  ;;  %s963_s27 = sshll.u32 %s959_s3, 4  ;;  %s962_s0 = int_to_ptr.vmem [resolvable:$true] %s961_s0  ;;  %s964_s27 = int_to_ptr.hbm [resolvable:$true] %s963_s27 }
 0x67c   : > { %s943_s12 = scalar_lea.sflag [#allocation6], %s1598_s20  ;;  %s1354_s28 = sshra.s32 %s964_s27, 4  ;;  %s1355_s28 = int_to_ptr.hbm [resolvable:$true] %s1354_s28 }
 0x67d   : > { %s1356_s23 = scalar_lea.hbm %s1355_s28, 8  ;;  %s1360_s29 = scalar_lea.hbm %s1778_s8, 16 }
 0x67e   : > { %p1357_p10 = scmp.ne.s32.totalorder %s1355_s28, %s1356_s23  ;;  %p1361_p13 = scmp.lt.s32.totalorder %s1355_s28, %s1778_s8 }
 0x67f   : > { %p1362_p0 = scmp.lt.s32.totalorder %s1360_s29, %s1356_s23 }
 0x680   : > { %p1358_p11 = pnand %p1357_p10, %p1527_p4 }
 0x681   : > { %p1363_p1 = por %p1362_p0, %p1361_p13 }
 0x682   : > { %p1359_p12 = pneg %p1358_p11 }
 0x684   : > { %p1364_p2 = pnand %p1363_p1, %p1359_p12 }
 0x6f2   : > { %v937_v50 = vpop.f32.mrf.mxu1 }
 0x6f3   : > { %v938_v51 = vadd.f32 %v1270_v35, %v937_v50 }
 0x6f5   : > { %941 = vst.msk [vmem:[%s357_s26] sm:$0xff] %vm408_vm0, %v938_v51 }
 0x6f6   : > { %1367 = shalt.err (!%p1364_p2)
}
 0x6f7   : > { %1195 = dma.vmem_to_hbm [thread:$0]  (%p1527_p4), %s962_s0, 128, %s964_s27, %s943_s12  }
 0x6fa   : > { %v939_v52 = vpop.f32.mrf.mxu1 }
 0x6fb PF: > { %p1212_p3 = scmp.ge.s32.totalorder %s1426_s14, 2  ;;  %s993_s20 = sand.u32 1, %s1406_s30  }
 0x6fc   : > { %s994_s1 = scalar_lea.sflag [#allocation6], %s993_s20 }
 0x6fd   : > { %p1204_p5 = pnand %p1212_p3, %p1534_p8 }
 0x6ff   : > { %p1205_p6 = pneg %p1204_p5 }
 0x701   : > { %1397 = dma.done.wait (%p1205_p6), %s994_s1, 128  }
 0x702   : > { %1399 = vsyncadd (%p1205_p6), %s994_s1, 4294967168  ;;  %s1004_s15 = scalar_lea.sflag [#allocation10], %s993_s20 }
 0x703   : > { %1401 = dma.done.wait (%p1205_p6), %s1004_s15, 512  }
 0x704   : > { %1403 = vsyncadd (%p1205_p6), %s1004_s15, 4294966784  ;;  %s27_s14 = sadd.s32 1, %s1426_s14   ;;  %s1792_s30 = smov %s1410_s10 }
 0x705   : > { %p24_p7 = scmp.ge.s32.totalorder %s27_s14, 4   ;;  %s1793_s10 = smov %s1414_s11 }
 0x706   : > { %s1794_s11 = smov %s1540_s22  ;;  %s1795_s12 = smov %s1422_s13 }
 0x707   : > { %s1796_s13 = smov %s1798_s17  ;;  %26 = sbr.rel (!%p24_p7) target bundleno = 13 (0xd), region = 117 }
 0x70c   :  { %1010 = vsyncpa [#allocation6], 1 }
 0x70d   :  { %1012 = vsyncpa [#allocation6 + $0x1], 1 }
 0x70e   :  { %1013 = vsyncpa [#allocation10], 1 }
 0x70f   :  { %1015 = vsyncpa [#allocation10 + $0x1], 1 }
 0x710   :  { %1016 = vsyncpa [#allocation7], 1 }
 0x711   :  { %1018 = vsyncpa [#allocation7 + $0x1], 1 }

</bundles_post_ra>
